<compile_context>
chip_gen: v6e
topology: v6e:2x2x1
jax: 0.10.0
libtpu: 0.0.40
codegen_flags: <defaults>
</compile_context>

<pallas_src>
import functools

import jax
import jax.numpy as jnp
from jax.experimental import pallas as pl
from jax.experimental.pallas import tpu as pltpu


def _layer_norm(v, gamma, beta, eps):
    mu = jnp.mean(v, axis=-1, keepdims=True)
    c = v - mu
    var = jnp.mean(c * c, axis=-1, keepdims=True)
    return c * jax.lax.rsqrt(var + eps) * gamma + beta


def _gelu_tanh(y):
    # TODO(synk): torch nn.GELU() default is the exact erf form; the tanh
    # approximation (max abs err ~3e-3 vs erf) is used for robust Mosaic lowering.
    c = 0.7978845608028654  # sqrt(2/pi)
    return 0.5 * y * (1.0 + jnp.tanh(c * (y + 0.044715 * y * y * y)))


# dot_general dimension numbers for A @ B^T without materializing a transpose.
_TRANS_B = (((1,), (1,)), ((), ()))


def encoder_layer_kernel(x_ref,
                         ln1_g_ref, ln1_b_ref,
                         wqkv_ref, bqkv_ref,
                         wproj_ref, bproj_ref,
                         ln2_g_ref, ln2_b_ref,
                         wfc1_ref, bfc1_ref,
                         wfc2_ref, bfc2_ref,
                         out_ref,
                         *, num_heads, eps):
    x = x_ref[0].astype(jnp.float32)                    # (N, D)
    n, d = x.shape
    hd = d // num_heads
    scale = float(hd) ** -0.5

    # ---- Attention block ---------------------------------------------------
    resid = x
    xn = _layer_norm(x, ln1_g_ref[...], ln1_b_ref[...], eps)

    qkv = jnp.dot(xn, wqkv_ref[...],
                  preferred_element_type=jnp.float32) + bqkv_ref[...]     # (N, 3D)
    q = qkv[:, 0:d]
    k = qkv[:, d:2 * d]
    v = qkv[:, 2 * d:3 * d]

    # Per-head attention: statically unrolled loop of plain 2-D MXU dots.
    head_outs = []
    for hi in range(num_heads):
        sl = slice(hi * hd, (hi + 1) * hd)
        qh, kh, vh = q[:, sl], k[:, sl], v[:, sl]
        s = jax.lax.dot_general(qh, kh, _TRANS_B,
                                preferred_element_type=jnp.float32) * scale  # (N, N)
        s = s - jnp.max(s, axis=-1, keepdims=True)
        p = jnp.exp(s)
        p = p / jnp.sum(p, axis=-1, keepdims=True)
        head_outs.append(jnp.dot(p, vh, preferred_element_type=jnp.float32))
    attn = jnp.concatenate(head_outs, axis=-1)          # (N, D)

    attn = jnp.dot(attn, wproj_ref[...],
                   preferred_element_type=jnp.float32) + bproj_ref[...]
    x = attn + resid

    # ---- MLP block -----------------------------------------------------------
    resid = x
    xn = _layer_norm(x, ln2_g_ref[...], ln2_b_ref[...], eps)
    y = jnp.dot(xn, wfc1_ref[...],
                preferred_element_type=jnp.float32) + bfc1_ref[...]       # (N, Dh)
    y = _gelu_tanh(y)
    y = jnp.dot(y, wfc2_ref[...],
                preferred_element_type=jnp.float32) + bfc2_ref[...]       # (N, D)
    # nn.Dropout is identity at inference.
    out_ref[0] = (y + resid).astype(out_ref.dtype)


def encoder_layer(x, params, *, num_heads, eps=1e-5):
    """x: (B, N, D). params: torch-layout weights. Returns (B, N, D)."""
    B, N, D = x.shape
    Dh = params["w_fc1"].shape[0]

    # Transpose the (small) Linear weights once in the wrapper so the kernel does
    # activations @ W^T as plain row-major matmuls; no activation reshuffling.
    wqkv_t = params["w_qkv"].T            # (D, 3D)
    wproj_t = params["w_proj"].T          # (D, D)
    wfc1_t = params["w_fc1"].T            # (D, Dh)
    wfc2_t = params["w_fc2"].T            # (Dh, D)

    row = lambda a: a.reshape(1, -1)
    # Constant index_map -> weights stay resident in VMEM across grid steps.
    full = lambda shape: pl.BlockSpec(shape, lambda b: (0, 0))

    return pl.pallas_call(
        functools.partial(encoder_layer_kernel, num_heads=num_heads, eps=eps),
        out_shape=jax.ShapeDtypeStruct((B, N, D), x.dtype),
        grid_spec=pltpu.PrefetchScalarGridSpec(
            num_scalar_prefetch=0,
            grid=(B,),
            in_specs=[
                pl.BlockSpec((1, N, D), lambda b: (b, 0, 0)),     # x
                full((1, D)), full((1, D)),                       # ln1 gamma/beta
                full((D, 3 * D)), full((1, 3 * D)),               # qkv W^T, b
                full((D, D)), full((1, D)),                       # proj W^T, b
                full((1, D)), full((1, D)),                       # ln2 gamma/beta
                full((D, Dh)), full((1, Dh)),                     # fc1 W^T, b
                full((Dh, D)), full((1, D)),                      # fc2 W^T, b
            ],
            out_specs=pl.BlockSpec((1, N, D), lambda b: (b, 0, 0)),
        ),
        compiler_params=pltpu.CompilerParams(
            dimension_semantics=("parallel",)),
    )(x,
      row(params["ln1_g"]), row(params["ln1_b"]),
      wqkv_t, row(params["b_qkv"]),
      wproj_t, row(params["b_proj"]),
      row(params["ln2_g"]), row(params["ln2_b"]),
      wfc1_t, row(params["b_fc1"]),
      wfc2_t, row(params["b_fc2"]))


def encoder_layer_ref(x, p, *, num_heads, eps=1e-5):
    """Plain-JAX reference mirroring the PyTorch EncoderLayer forward."""
    B, N, D = x.shape
    hd = D // num_heads

    def ln(v, g, b):
        mu = v.mean(-1, keepdims=True)
        c = v - mu
        var = (c * c).mean(-1, keepdims=True)
        return c * jax.lax.rsqrt(var + eps) * g + b

    h = x
    xn = ln(x, p["ln1_g"], p["ln1_b"])
    qkv = xn @ p["w_qkv"].T + p["b_qkv"]
    q, k, v = jnp.split(qkv, 3, axis=-1)
    to_heads = lambda t: t.reshape(B, N, num_heads, hd).transpose(0, 2, 1, 3)
    q, k, v = to_heads(q), to_heads(k), to_heads(v)
    attn = (q @ jnp.swapaxes(k, -1, -2)) * (hd ** -0.5)
    attn = jax.nn.softmax(attn, axis=-1)
    o = (attn @ v).transpose(0, 2, 1, 3).reshape(B, N, D)
    o = o @ p["w_proj"].T + p["b_proj"]
    x = o + h
    h = x
    xn = ln(x, p["ln2_g"], p["ln2_b"])
    y = xn @ p["w_fc1"].T + p["b_fc1"]
    y = _gelu_tanh(y)
    y = y @ p["w_fc2"].T + p["b_fc2"]
    return y + h


if __name__ == "__main__":
    # Small shapes consistent with the module: batch=2, seq=8, embed_dim=32,
    # num_heads=4 (head_dim=8), mlp_ratio=4 -> hidden=128.
    B, N, D = 2, 8, 32
    num_heads = 4
    Dh = int(D * 4.0)

    key = jax.random.PRNGKey(0)
    keys = jax.random.split(key, 13)
    x = jax.random.normal(keys[0], (B, N, D), dtype=jnp.float32)
    params = {
        "ln1_g": 1.0 + 0.1 * jax.random.normal(keys[1], (D,), jnp.float32),
        "ln1_b": 0.1 * jax.random.normal(keys[2], (D,), jnp.float32),
        "w_qkv": 0.1 * jax.random.normal(keys[3], (3 * D, D), jnp.float32),
        "b_qkv": 0.1 * jax.random.normal(keys[4], (3 * D,), jnp.float32),
        "w_proj": 0.1 * jax.random.normal(keys[5], (D, D), jnp.float32),
        "b_proj": 0.1 * jax.random.normal(keys[6], (D,), jnp.float32),
        "ln2_g": 1.0 + 0.1 * jax.random.normal(keys[7], (D,), jnp.float32),
        "ln2_b": 0.1 * jax.random.normal(keys[8], (D,), jnp.float32),
        "w_fc1": 0.1 * jax.random.normal(keys[9], (Dh, D), jnp.float32),
        "b_fc1": 0.1 * jax.random.normal(keys[10], (Dh,), jnp.float32),
        "w_fc2": 0.1 * jax.random.normal(keys[11], (D, Dh), jnp.float32),
        "b_fc2": 0.1 * jax.random.normal(keys[12], (D,), jnp.float32),
    }

    out = encoder_layer(x, params, num_heads=num_heads)
    out = jax.block_until_ready(out)

    ref = encoder_layer_ref(x, params, num_heads=num_heads)

    assert out.shape == (B, N, D)
    max_err = float(jnp.max(jnp.abs(out - ref)))
    assert jnp.allclose(out, ref, atol=1e-4, rtol=1e-4), max_err
    print("KERNEL_OK")
</pallas_src>

<mosaic_0001>
module attributes {stable_mosaic.version = 11 : i64} {
  func.func @encoder_layer_kernel(%arg0: i32, %arg1: memref<1x8x32xf32, #tpu.memory_space<vmem>>, %arg2: memref<1x32xf32, #tpu.memory_space<vmem>>, %arg3: memref<1x32xf32, #tpu.memory_space<vmem>>, %arg4: memref<32x96xf32, #tpu.memory_space<vmem>>, %arg5: memref<1x96xf32, #tpu.memory_space<vmem>>, %arg6: memref<32x32xf32, #tpu.memory_space<vmem>>, %arg7: memref<1x32xf32, #tpu.memory_space<vmem>>, %arg8: memref<1x32xf32, #tpu.memory_space<vmem>>, %arg9: memref<1x32xf32, #tpu.memory_space<vmem>>, %arg10: memref<32x128xf32, #tpu.memory_space<vmem>>, %arg11: memref<1x128xf32, #tpu.memory_space<vmem>>, %arg12: memref<128x32xf32, #tpu.memory_space<vmem>>, %arg13: memref<1x32xf32, #tpu.memory_space<vmem>>, %arg14: memref<1x8x32xf32, #tpu.memory_space<vmem>>) attributes {dimension_semantics = [#tpu.dimension_semantics<parallel>], iteration_bounds = array<i64: 2>, scalar_prefetch = 0 : i64, scratch_operands = 0 : i64, tpu.core_type = #tpu.core_type<tc>, window_params = [{transform_indices = @transform_0, window_bounds = array<i64: 1, 8, 32>}, {pipeline_mode = #tpu.pipeline_mode<synchronous>, transform_indices = @transform_1, window_bounds = array<i64: 1, 32>}, {pipeline_mode = #tpu.pipeline_mode<synchronous>, transform_indices = @transform_2, window_bounds = array<i64: 1, 32>}, {pipeline_mode = #tpu.pipeline_mode<synchronous>, transform_indices = @transform_3, window_bounds = array<i64: 32, 96>}, {pipeline_mode = #tpu.pipeline_mode<synchronous>, transform_indices = @transform_4, window_bounds = array<i64: 1, 96>}, {pipeline_mode = #tpu.pipeline_mode<synchronous>, transform_indices = @transform_5, window_bounds = array<i64: 32, 32>}, {pipeline_mode = #tpu.pipeline_mode<synchronous>, transform_indices = @transform_6, window_bounds = array<i64: 1, 32>}, {pipeline_mode = #tpu.pipeline_mode<synchronous>, transform_indices = @transform_7, window_bounds = array<i64: 1, 32>}, {pipeline_mode = #tpu.pipeline_mode<synchronous>, transform_indices = @transform_8, window_bounds = array<i64: 1, 32>}, {pipeline_mode = #tpu.pipeline_mode<synchronous>, transform_indices = @transform_9, window_bounds = array<i64: 32, 128>}, {pipeline_mode = #tpu.pipeline_mode<synchronous>, transform_indices = @transform_10, window_bounds = array<i64: 1, 128>}, {pipeline_mode = #tpu.pipeline_mode<synchronous>, transform_indices = @transform_11, window_bounds = array<i64: 128, 32>}, {pipeline_mode = #tpu.pipeline_mode<synchronous>, transform_indices = @transform_12, window_bounds = array<i64: 1, 32>}, {transform_indices = @transform_13, window_bounds = array<i64: 1, 8, 32>}]} {
    %c0 = arith.constant 0 : index
    %c0_0 = arith.constant 0 : index
    %c0_1 = arith.constant 0 : index
    %0 = vector.load %arg1[%c0, %c0_0, %c0_1] : memref<1x8x32xf32, #tpu.memory_space<vmem>>, vector<1x8x32xf32>
    %1 = vector.shape_cast %0 : vector<1x8x32xf32> to vector<8x32xf32>
    %c0_2 = arith.constant 0 : index
    %c0_3 = arith.constant 0 : index
    %2 = vector.load %arg2[%c0_2, %c0_3] : memref<1x32xf32, #tpu.memory_space<vmem>>, vector<1x32xf32>
    %c0_4 = arith.constant 0 : index
    %c0_5 = arith.constant 0 : index
    %3 = vector.load %arg3[%c0_4, %c0_5] : memref<1x32xf32, #tpu.memory_space<vmem>>, vector<1x32xf32>
    %cst = arith.constant dense<0.000000e+00> : vector<8xf32>
    %4 = vector.multi_reduction <add>, %1, %cst [1] : vector<8x32xf32> to vector<8xf32>
    %5 = vector.shape_cast %4 : vector<8xf32> to vector<8x1xf32>
    %cst_6 = arith.constant 3.200000e+01 : f32
    %6 = vector.broadcast %cst_6 : f32 to vector<8x1xf32>
    %7 = arith.divf %5, %6 : vector<8x1xf32>
    %8 = vector.broadcast %7 : vector<8x1xf32> to vector<8x32xf32>
    %9 = arith.subf %1, %8 : vector<8x32xf32>
    %10 = arith.mulf %9, %9 : vector<8x32xf32>
    %cst_7 = arith.constant dense<0.000000e+00> : vector<8xf32>
    %11 = vector.multi_reduction <add>, %10, %cst_7 [1] : vector<8x32xf32> to vector<8xf32>
    %12 = vector.shape_cast %11 : vector<8xf32> to vector<8x1xf32>
    %cst_8 = arith.constant 3.200000e+01 : f32
    %13 = vector.broadcast %cst_8 : f32 to vector<8x1xf32>
    %14 = arith.divf %12, %13 : vector<8x1xf32>
    %cst_9 = arith.constant 9.99999974E-6 : f32
    %15 = vector.broadcast %cst_9 : f32 to vector<8x1xf32>
    %16 = arith.addf %14, %15 : vector<8x1xf32>
    %17 = math.rsqrt %16 : vector<8x1xf32>
    %18 = vector.broadcast %17 : vector<8x1xf32> to vector<8x32xf32>
    %19 = arith.mulf %9, %18 : vector<8x32xf32>
    %20 = vector.broadcast %2 : vector<1x32xf32> to vector<8x32xf32>
    %21 = arith.mulf %19, %20 : vector<8x32xf32>
    %22 = vector.broadcast %3 : vector<1x32xf32> to vector<8x32xf32>
    %23 = arith.addf %21, %22 : vector<8x32xf32>
    %c0_10 = arith.constant 0 : index
    %c0_11 = arith.constant 0 : index
    %24 = vector.load %arg4[%c0_10, %c0_11] : memref<32x96xf32, #tpu.memory_space<vmem>>, vector<32x96xf32>
    %cst_12 = arith.constant dense<0.000000e+00> : vector<8x96xf32>
    %25 = tpu.matmul %23, %24, %cst_12 {dimension_numbers = #tpu.dot_dimension_numbers<[1], [0], [0], [1], [0, 0, 1, 1], [], []>} : vector<8x32xf32>, vector<32x96xf32>, vector<8x96xf32> -> vector<8x96xf32>
    %c0_13 = arith.constant 0 : index
    %c0_14 = arith.constant 0 : index
    %26 = vector.load %arg5[%c0_13, %c0_14] : memref<1x96xf32, #tpu.memory_space<vmem>>, vector<1x96xf32>
    %27 = vector.broadcast %26 : vector<1x96xf32> to vector<8x96xf32>
    %28 = arith.addf %25, %27 : vector<8x96xf32>
    %29 = vector.extract_strided_slice %28 {offsets = [0, 0], sizes = [8, 32], strides = [1, 1]} : vector<8x96xf32> to vector<8x32xf32>
    %30 = vector.extract_strided_slice %28 {offsets = [0, 32], sizes = [8, 32], strides = [1, 1]} : vector<8x96xf32> to vector<8x32xf32>
    %31 = vector.extract_strided_slice %28 {offsets = [0, 64], sizes = [8, 32], strides = [1, 1]} : vector<8x96xf32> to vector<8x32xf32>
    %32 = vector.extract_strided_slice %29 {offsets = [0, 0], sizes = [8, 8], strides = [1, 1]} : vector<8x32xf32> to vector<8x8xf32>
    %33 = vector.extract_strided_slice %30 {offsets = [0, 0], sizes = [8, 8], strides = [1, 1]} : vector<8x32xf32> to vector<8x8xf32>
    %34 = vector.extract_strided_slice %31 {offsets = [0, 0], sizes = [8, 8], strides = [1, 1]} : vector<8x32xf32> to vector<8x8xf32>
    %cst_15 = arith.constant dense<0.000000e+00> : vector<8x8xf32>
    %35 = tpu.matmul %32, %33, %cst_15 {dimension_numbers = #tpu.dot_dimension_numbers<[1], [1], [0], [0], [0, 0, 1, 0], [], []>} : vector<8x8xf32>, vector<8x8xf32>, vector<8x8xf32> -> vector<8x8xf32>
    %cst_16 = arith.constant 0.353553385 : f32
    %36 = vector.broadcast %cst_16 : f32 to vector<8x8xf32>
    %37 = arith.mulf %35, %36 : vector<8x8xf32>
    %cst_17 = arith.constant dense<0xFF800000> : vector<8xf32>
    %38 = vector.multi_reduction <maximumf>, %37, %cst_17 [1] : vector<8x8xf32> to vector<8xf32>
    %39 = vector.shape_cast %38 : vector<8xf32> to vector<8x1xf32>
    %40 = vector.broadcast %39 : vector<8x1xf32> to vector<8x8xf32>
    %41 = arith.subf %37, %40 : vector<8x8xf32>
    %42 = math.exp %41 : vector<8x8xf32>
    %cst_18 = arith.constant dense<0.000000e+00> : vector<8xf32>
    %43 = vector.multi_reduction <add>, %42, %cst_18 [1] : vector<8x8xf32> to vector<8xf32>
    %44 = vector.shape_cast %43 : vector<8xf32> to vector<8x1xf32>
    %45 = vector.broadcast %44 : vector<8x1xf32> to vector<8x8xf32>
    %46 = arith.divf %42, %45 : vector<8x8xf32>
    %cst_19 = arith.constant dense<0.000000e+00> : vector<8x8xf32>
    %47 = tpu.matmul %46, %34, %cst_19 {dimension_numbers = #tpu.dot_dimension_numbers<[1], [0], [0], [1], [0, 0, 1, 1], [], []>} : vector<8x8xf32>, vector<8x8xf32>, vector<8x8xf32> -> vector<8x8xf32>
    %48 = vector.extract_strided_slice %29 {offsets = [0, 8], sizes = [8, 8], strides = [1, 1]} : vector<8x32xf32> to vector<8x8xf32>
    %49 = vector.extract_strided_slice %30 {offsets = [0, 8], sizes = [8, 8], strides = [1, 1]} : vector<8x32xf32> to vector<8x8xf32>
    %50 = vector.extract_strided_slice %31 {offsets = [0, 8], sizes = [8, 8], strides = [1, 1]} : vector<8x32xf32> to vector<8x8xf32>
    %cst_20 = arith.constant dense<0.000000e+00> : vector<8x8xf32>
    %51 = tpu.matmul %48, %49, %cst_20 {dimension_numbers = #tpu.dot_dimension_numbers<[1], [1], [0], [0], [0, 0, 1, 0], [], []>} : vector<8x8xf32>, vector<8x8xf32>, vector<8x8xf32> -> vector<8x8xf32>
    %cst_21 = arith.constant 0.353553385 : f32
    %52 = vector.broadcast %cst_21 : f32 to vector<8x8xf32>
    %53 = arith.mulf %51, %52 : vector<8x8xf32>
    %cst_22 = arith.constant dense<0xFF800000> : vector<8xf32>
    %54 = vector.multi_reduction <maximumf>, %53, %cst_22 [1] : vector<8x8xf32> to vector<8xf32>
    %55 = vector.shape_cast %54 : vector<8xf32> to vector<8x1xf32>
    %56 = vector.broadcast %55 : vector<8x1xf32> to vector<8x8xf32>
    %57 = arith.subf %53, %56 : vector<8x8xf32>
    %58 = math.exp %57 : vector<8x8xf32>
    %cst_23 = arith.constant dense<0.000000e+00> : vector<8xf32>
    %59 = vector.multi_reduction <add>, %58, %cst_23 [1] : vector<8x8xf32> to vector<8xf32>
    %60 = vector.shape_cast %59 : vector<8xf32> to vector<8x1xf32>
    %61 = vector.broadcast %60 : vector<8x1xf32> to vector<8x8xf32>
    %62 = arith.divf %58, %61 : vector<8x8xf32>
    %cst_24 = arith.constant dense<0.000000e+00> : vector<8x8xf32>
    %63 = tpu.matmul %62, %50, %cst_24 {dimension_numbers = #tpu.dot_dimension_numbers<[1], [0], [0], [1], [0, 0, 1, 1], [], []>} : vector<8x8xf32>, vector<8x8xf32>, vector<8x8xf32> -> vector<8x8xf32>
    %64 = vector.extract_strided_slice %29 {offsets = [0, 16], sizes = [8, 8], strides = [1, 1]} : vector<8x32xf32> to vector<8x8xf32>
    %65 = vector.extract_strided_slice %30 {offsets = [0, 16], sizes = [8, 8], strides = [1, 1]} : vector<8x32xf32> to vector<8x8xf32>
    %66 = vector.extract_strided_slice %31 {offsets = [0, 16], sizes = [8, 8], strides = [1, 1]} : vector<8x32xf32> to vector<8x8xf32>
    %cst_25 = arith.constant dense<0.000000e+00> : vector<8x8xf32>
    %67 = tpu.matmul %64, %65, %cst_25 {dimension_numbers = #tpu.dot_dimension_numbers<[1], [1], [0], [0], [0, 0, 1, 0], [], []>} : vector<8x8xf32>, vector<8x8xf32>, vector<8x8xf32> -> vector<8x8xf32>
    %cst_26 = arith.constant 0.353553385 : f32
    %68 = vector.broadcast %cst_26 : f32 to vector<8x8xf32>
    %69 = arith.mulf %67, %68 : vector<8x8xf32>
    %cst_27 = arith.constant dense<0xFF800000> : vector<8xf32>
    %70 = vector.multi_reduction <maximumf>, %69, %cst_27 [1] : vector<8x8xf32> to vector<8xf32>
    %71 = vector.shape_cast %70 : vector<8xf32> to vector<8x1xf32>
    %72 = vector.broadcast %71 : vector<8x1xf32> to vector<8x8xf32>
    %73 = arith.subf %69, %72 : vector<8x8xf32>
    %74 = math.exp %73 : vector<8x8xf32>
    %cst_28 = arith.constant dense<0.000000e+00> : vector<8xf32>
    %75 = vector.multi_reduction <add>, %74, %cst_28 [1] : vector<8x8xf32> to vector<8xf32>
    %76 = vector.shape_cast %75 : vector<8xf32> to vector<8x1xf32>
    %77 = vector.broadcast %76 : vector<8x1xf32> to vector<8x8xf32>
    %78 = arith.divf %74, %77 : vector<8x8xf32>
    %cst_29 = arith.constant dense<0.000000e+00> : vector<8x8xf32>
    %79 = tpu.matmul %78, %66, %cst_29 {dimension_numbers = #tpu.dot_dimension_numbers<[1], [0], [0], [1], [0, 0, 1, 1], [], []>} : vector<8x8xf32>, vector<8x8xf32>, vector<8x8xf32> -> vector<8x8xf32>
    %80 = vector.extract_strided_slice %29 {offsets = [0, 24], sizes = [8, 8], strides = [1, 1]} : vector<8x32xf32> to vector<8x8xf32>
    %81 = vector.extract_strided_slice %30 {offsets = [0, 24], sizes = [8, 8], strides = [1, 1]} : vector<8x32xf32> to vector<8x8xf32>
    %82 = vector.extract_strided_slice %31 {offsets = [0, 24], sizes = [8, 8], strides = [1, 1]} : vector<8x32xf32> to vector<8x8xf32>
    %cst_30 = arith.constant dense<0.000000e+00> : vector<8x8xf32>
    %83 = tpu.matmul %80, %81, %cst_30 {dimension_numbers = #tpu.dot_dimension_numbers<[1], [1], [0], [0], [0, 0, 1, 0], [], []>} : vector<8x8xf32>, vector<8x8xf32>, vector<8x8xf32> -> vector<8x8xf32>
    %cst_31 = arith.constant 0.353553385 : f32
    %84 = vector.broadcast %cst_31 : f32 to vector<8x8xf32>
    %85 = arith.mulf %83, %84 : vector<8x8xf32>
    %cst_32 = arith.constant dense<0xFF800000> : vector<8xf32>
    %86 = vector.multi_reduction <maximumf>, %85, %cst_32 [1] : vector<8x8xf32> to vector<8xf32>
    %87 = vector.shape_cast %86 : vector<8xf32> to vector<8x1xf32>
    %88 = vector.broadcast %87 : vector<8x1xf32> to vector<8x8xf32>
    %89 = arith.subf %85, %88 : vector<8x8xf32>
    %90 = math.exp %89 : vector<8x8xf32>
    %cst_33 = arith.constant dense<0.000000e+00> : vector<8xf32>
    %91 = vector.multi_reduction <add>, %90, %cst_33 [1] : vector<8x8xf32> to vector<8xf32>
    %92 = vector.shape_cast %91 : vector<8xf32> to vector<8x1xf32>
    %93 = vector.broadcast %92 : vector<8x1xf32> to vector<8x8xf32>
    %94 = arith.divf %90, %93 : vector<8x8xf32>
    %cst_34 = arith.constant dense<0.000000e+00> : vector<8x8xf32>
    %95 = tpu.matmul %94, %82, %cst_34 {dimension_numbers = #tpu.dot_dimension_numbers<[1], [0], [0], [1], [0, 0, 1, 1], [], []>} : vector<8x8xf32>, vector<8x8xf32>, vector<8x8xf32> -> vector<8x8xf32>
    %96 = tpu.concatenate %47, %63, %79, %95 in 1 : vector<8x8xf32>, vector<8x8xf32>, vector<8x8xf32>, vector<8x8xf32> -> vector<8x32xf32>
    %c0_35 = arith.constant 0 : index
    %c0_36 = arith.constant 0 : index
    %97 = vector.load %arg6[%c0_35, %c0_36] : memref<32x32xf32, #tpu.memory_space<vmem>>, vector<32x32xf32>
    %cst_37 = arith.constant dense<0.000000e+00> : vector<8x32xf32>
    %98 = tpu.matmul %96, %97, %cst_37 {dimension_numbers = #tpu.dot_dimension_numbers<[1], [0], [0], [1], [0, 0, 1, 1], [], []>} : vector<8x32xf32>, vector<32x32xf32>, vector<8x32xf32> -> vector<8x32xf32>
    %c0_38 = arith.constant 0 : index
    %c0_39 = arith.constant 0 : index
    %99 = vector.load %arg7[%c0_38, %c0_39] : memref<1x32xf32, #tpu.memory_space<vmem>>, vector<1x32xf32>
    %100 = vector.broadcast %99 : vector<1x32xf32> to vector<8x32xf32>
    %101 = arith.addf %98, %100 : vector<8x32xf32>
    %102 = arith.addf %101, %1 : vector<8x32xf32>
    %c0_40 = arith.constant 0 : index
    %c0_41 = arith.constant 0 : index
    %103 = vector.load %arg8[%c0_40, %c0_41] : memref<1x32xf32, #tpu.memory_space<vmem>>, vector<1x32xf32>
    %c0_42 = arith.constant 0 : index
    %c0_43 = arith.constant 0 : index
    %104 = vector.load %arg9[%c0_42, %c0_43] : memref<1x32xf32, #tpu.memory_space<vmem>>, vector<1x32xf32>
    %cst_44 = arith.constant dense<0.000000e+00> : vector<8xf32>
    %105 = vector.multi_reduction <add>, %102, %cst_44 [1] : vector<8x32xf32> to vector<8xf32>
    %106 = vector.shape_cast %105 : vector<8xf32> to vector<8x1xf32>
    %cst_45 = arith.constant 3.200000e+01 : f32
    %107 = vector.broadcast %cst_45 : f32 to vector<8x1xf32>
    %108 = arith.divf %106, %107 : vector<8x1xf32>
    %109 = vector.broadcast %108 : vector<8x1xf32> to vector<8x32xf32>
    %110 = arith.subf %102, %109 : vector<8x32xf32>
    %111 = arith.mulf %110, %110 : vector<8x32xf32>
    %cst_46 = arith.constant dense<0.000000e+00> : vector<8xf32>
    %112 = vector.multi_reduction <add>, %111, %cst_46 [1] : vector<8x32xf32> to vector<8xf32>
    %113 = vector.shape_cast %112 : vector<8xf32> to vector<8x1xf32>
    %cst_47 = arith.constant 3.200000e+01 : f32
    %114 = vector.broadcast %cst_47 : f32 to vector<8x1xf32>
    %115 = arith.divf %113, %114 : vector<8x1xf32>
    %cst_48 = arith.constant 9.99999974E-6 : f32
    %116 = vector.broadcast %cst_48 : f32 to vector<8x1xf32>
    %117 = arith.addf %115, %116 : vector<8x1xf32>
    %118 = math.rsqrt %117 : vector<8x1xf32>
    %119 = vector.broadcast %118 : vector<8x1xf32> to vector<8x32xf32>
    %120 = arith.mulf %110, %119 : vector<8x32xf32>
    %121 = vector.broadcast %103 : vector<1x32xf32> to vector<8x32xf32>
    %122 = arith.mulf %120, %121 : vector<8x32xf32>
    %123 = vector.broadcast %104 : vector<1x32xf32> to vector<8x32xf32>
    %124 = arith.addf %122, %123 : vector<8x32xf32>
    %c0_49 = arith.constant 0 : index
    %c0_50 = arith.constant 0 : index
    %125 = vector.load %arg10[%c0_49, %c0_50] : memref<32x128xf32, #tpu.memory_space<vmem>>, vector<32x128xf32>
    %cst_51 = arith.constant dense<0.000000e+00> : vector<8x128xf32>
    %126 = tpu.matmul %124, %125, %cst_51 {dimension_numbers = #tpu.dot_dimension_numbers<[1], [0], [0], [1], [0, 0, 1, 1], [], []>} : vector<8x32xf32>, vector<32x128xf32>, vector<8x128xf32> -> vector<8x128xf32>
    %c0_52 = arith.constant 0 : index
    %c0_53 = arith.constant 0 : index
    %127 = vector.load %arg11[%c0_52, %c0_53] : memref<1x128xf32, #tpu.memory_space<vmem>>, vector<1x128xf32>
    %128 = vector.broadcast %127 : vector<1x128xf32> to vector<8x128xf32>
    %129 = arith.addf %126, %128 : vector<8x128xf32>
    %cst_54 = arith.constant 5.000000e-01 : f32
    %130 = vector.broadcast %cst_54 : f32 to vector<8x128xf32>
    %131 = arith.mulf %130, %129 : vector<8x128xf32>
    %cst_55 = arith.constant 4.471500e-02 : f32
    %132 = vector.broadcast %cst_55 : f32 to vector<8x128xf32>
    %133 = arith.mulf %132, %129 : vector<8x128xf32>
    %134 = arith.mulf %133, %129 : vector<8x128xf32>
    %135 = arith.mulf %134, %129 : vector<8x128xf32>
    %136 = arith.addf %129, %135 : vector<8x128xf32>
    %cst_56 = arith.constant 0.797884583 : f32
    %137 = vector.broadcast %cst_56 : f32 to vector<8x128xf32>
    %138 = arith.mulf %137, %136 : vector<8x128xf32>
    %139 = math.tanh %138 : vector<8x128xf32>
    %cst_57 = arith.constant 1.000000e+00 : f32
    %140 = vector.broadcast %cst_57 : f32 to vector<8x128xf32>
    %141 = arith.addf %140, %139 : vector<8x128xf32>
    %142 = arith.mulf %131, %141 : vector<8x128xf32>
    %c0_58 = arith.constant 0 : index
    %c0_59 = arith.constant 0 : index
    %143 = vector.load %arg12[%c0_58, %c0_59] : memref<128x32xf32, #tpu.memory_space<vmem>>, vector<128x32xf32>
    %cst_60 = arith.constant dense<0.000000e+00> : vector<8x32xf32>
    %144 = tpu.matmul %142, %143, %cst_60 {dimension_numbers = #tpu.dot_dimension_numbers<[1], [0], [0], [1], [0, 0, 1, 1], [], []>} : vector<8x128xf32>, vector<128x32xf32>, vector<8x32xf32> -> vector<8x32xf32>
    %c0_61 = arith.constant 0 : index
    %c0_62 = arith.constant 0 : index
    %145 = vector.load %arg13[%c0_61, %c0_62] : memref<1x32xf32, #tpu.memory_space<vmem>>, vector<1x32xf32>
    %146 = vector.broadcast %145 : vector<1x32xf32> to vector<8x32xf32>
    %147 = arith.addf %144, %146 : vector<8x32xf32>
    %148 = arith.addf %147, %102 : vector<8x32xf32>
    %c0_63 = arith.constant 0 : index
    %c0_64 = arith.constant 0 : index
    %c0_65 = arith.constant 0 : index
    %149 = vector.load %arg14[%c0_63, %c0_64, %c0_65] : memref<1x8x32xf32, #tpu.memory_space<vmem>>, vector<1x8x32xf32>
    %150 = vector.shape_cast %149 : vector<1x8x32xf32> to vector<8x32xf32>
    %151 = vector.shape_cast %148 : vector<8x32xf32> to vector<1x8x32xf32>
    tpu.vector_store %arg14[%c0_63, %c0_64, %c0_65], %151 {strides = array<i32>} : memref<1x8x32xf32, #tpu.memory_space<vmem>>, vector<1x8x32xf32>,
    return
  }
  func.func @transform_0(%arg0: i32) -> (i32, i32, i32) {
    %c0_i32 = arith.constant 0 : i32
    %c0_i32_0 = arith.constant 0 : i32
    %c0_i32_1 = arith.constant 0 : i32
    return %arg0, %c0_i32, %c0_i32_0 : i32, i32, i32
  }
  func.func @transform_1(%arg0: i32) -> (i32, i32) {
    %c0_i32 = arith.constant 0 : i32
    %c0_i32_0 = arith.constant 0 : i32
    %c0_i32_1 = arith.constant 0 : i32
    return %c0_i32, %c0_i32_0 : i32, i32
  }
  func.func @transform_2(%arg0: i32) -> (i32, i32) {
    %c0_i32 = arith.constant 0 : i32
    %c0_i32_0 = arith.constant 0 : i32
    %c0_i32_1 = arith.constant 0 : i32
    return %c0_i32, %c0_i32_0 : i32, i32
  }
  func.func @transform_3(%arg0: i32) -> (i32, i32) {
    %c0_i32 = arith.constant 0 : i32
    %c0_i32_0 = arith.constant 0 : i32
    %c0_i32_1 = arith.constant 0 : i32
    return %c0_i32, %c0_i32_0 : i32, i32
  }
  func.func @transform_4(%arg0: i32) -> (i32, i32) {
    %c0_i32 = arith.constant 0 : i32
    %c0_i32_0 = arith.constant 0 : i32
    %c0_i32_1 = arith.constant 0 : i32
    return %c0_i32, %c0_i32_0 : i32, i32
  }
  func.func @transform_5(%arg0: i32) -> (i32, i32) {
    %c0_i32 = arith.constant 0 : i32
    %c0_i32_0 = arith.constant 0 : i32
    %c0_i32_1 = arith.constant 0 : i32
    return %c0_i32, %c0_i32_0 : i32, i32
  }
  func.func @transform_6(%arg0: i32) -> (i32, i32) {
    %c0_i32 = arith.constant 0 : i32
    %c0_i32_0 = arith.constant 0 : i32
    %c0_i32_1 = arith.constant 0 : i32
    return %c0_i32, %c0_i32_0 : i32, i32
  }
  func.func @transform_7(%arg0: i32) -> (i32, i32) {
    %c0_i32 = arith.constant 0 : i32
    %c0_i32_0 = arith.constant 0 : i32
    %c0_i32_1 = arith.constant 0 : i32
    return %c0_i32, %c0_i32_0 : i32, i32
  }
  func.func @transform_8(%arg0: i32) -> (i32, i32) {
    %c0_i32 = arith.constant 0 : i32
    %c0_i32_0 = arith.constant 0 : i32
    %c0_i32_1 = arith.constant 0 : i32
    return %c0_i32, %c0_i32_0 : i32, i32
  }
  func.func @transform_9(%arg0: i32) -> (i32, i32) {
    %c0_i32 = arith.constant 0 : i32
    %c0_i32_0 = arith.constant 0 : i32
    %c0_i32_1 = arith.constant 0 : i32
    return %c0_i32, %c0_i32_0 : i32, i32
  }
  func.func @transform_10(%arg0: i32) -> (i32, i32) {
    %c0_i32 = arith.constant 0 : i32
    %c0_i32_0 = arith.constant 0 : i32
    %c0_i32_1 = arith.constant 0 : i32
    return %c0_i32, %c0_i32_0 : i32, i32
  }
  func.func @transform_11(%arg0: i32) -> (i32, i32) {
    %c0_i32 = arith.constant 0 : i32
    %c0_i32_0 = arith.constant 0 : i32
    %c0_i32_1 = arith.constant 0 : i32
    return %c0_i32, %c0_i32_0 : i32, i32
  }
  func.func @transform_12(%arg0: i32) -> (i32, i32) {
    %c0_i32 = arith.constant 0 : i32
    %c0_i32_0 = arith.constant 0 : i32
    %c0_i32_1 = arith.constant 0 : i32
    return %c0_i32, %c0_i32_0 : i32, i32
  }
  func.func @transform_13(%arg0: i32) -> (i32, i32, i32) {
    %c0_i32 = arith.constant 0 : i32
    %c0_i32_0 = arith.constant 0 : i32
    %c0_i32_1 = arith.constant 0 : i32
    return %arg0, %c0_i32, %c0_i32_0 : i32, i32, i32
  }
}

</mosaic_0001>

<bundles_post_ra>
// kernel: tpu_custom_call.1
= control target key start
LH: loop header
LB: loop body
LE: loop exit
PB: predicated region body
PF: predicated region fallthrough
CT: control target
= control target key end

     0   :  { %s2331_s0 = inlined_call_operand.vmem [shape: f32[2,8,32], index: 0, kind: input, shape index: {}]   ;;  %s2332_s1 = inlined_call_operand.vmem [shape: f32[1,32], index: 1, kind: input, shape index: {}]   ;;  %s2333_s2 = inlined_call_operand.vmem [shape: f32[1,32], index: 2, kind: input, shape index: {}]   ;;  %s2334_s3 = inlined_call_operand.vmem [shape: f32[32,96], index: 3, kind: input, shape index: {}]   ;;  %s2335_s4 = inlined_call_operand.vmem [shape: f32[1,96], index: 4, kind: input, shape index: {}]   ;;  %s2336_s5 = inlined_call_operand.vmem [shape: f32[32,32], index: 5, kind: input, shape index: {}]   ;;  %s2337_s6 = inlined_call_operand.vmem [shape: f32[1,32], index: 6, kind: input, shape index: {}]   ;;  %s2338_s7 = inlined_call_operand.vmem [shape: f32[1,32], index: 7, kind: input, shape index: {}]   ;;  %s2339_s8 = inlined_call_operand.vmem [shape: f32[1,32], index: 8, kind: input, shape index: {}]   ;;  %s2340_s9 = inlined_call_operand.vmem [shape: f32[32,128], index: 9, kind: input, shape index: {}]   ;;  %s2341_s10 = inlined_call_operand.vmem [shape: f32[1,128], index: 10, kind: input, shape index: {}]   ;;  %s2342_s11 = inlined_call_operand.vmem [shape: f32[128,32], index: 11, kind: input, shape index: {}]   ;;  %s2343_s12 = inlined_call_operand.vmem [shape: f32[1,32], index: 12, kind: input, shape index: {}]   ;;  %s2344_s13 = inlined_call_operand.hbm [shape: f32[2,8,32], index: 13, kind: output, shape index: {}]  }
   0x1   :  { %2345 = sst [smem:[#allocation5_spill]] %s2331_s0 }
   0x2   :  { %2346 = sst [smem:[#allocation6_spill]] %s2332_s1 }
   0x3   :  { %2347 = sst [smem:[#allocation7_spill]] %s2333_s2 }
   0x4   :  { %2348 = sst [smem:[#allocation8_spill]] %s2334_s3 }
   0x5   :  { %18 = vsyncpa [#allocation3], 0 }
   0x6   :  { %20 = vsyncpa [#allocation3 + $0x1], 0  ;;  %s2023_s25 = smov 0   ;;  %s2025_s26 = smov 0  }
   0x7   :  { %s2027_s27 = smov 0   ;;  %s2029_s28 = smov 0  }
   0x8 LB: > { %s2044_s29 = sadd.s32 4294967295, %s1934_s28   ;;  %s1608_s30 = sadd.s32 4294967294, %s1934_s28   ;;  %s1934_s28 = sphi %s2029_s28, %s2358_s28   ;;  %s1930_s27 = sphi %s2027_s27, %s2357_s27   ;;  %s1926_s26 = sphi %s2025_s26, %s2356_s26   ;;  %s1922_s25 = sphi %s2023_s25, %s2355_s25  }
   0x9   : > { %s2048_s14 = sadd.s32 1, %s1934_s28   ;;  %s311_s15 = sadd.s32 1, %s1930_s27 }
   0xa   : > { %s308_s16 = ssub.s32 %s1934_s28, %s2048_s14  ;;  %p321_p0 = scmp.ne.s32.totalorder %s1930_s27, %s1926_s26 }
   0xb   : > { %p309_p1 = scmp.eq.s32.totalorder %s308_s16, 0  ;;  %p322_p2 = scmp.eq.s32.totalorder %s2044_s29, 1 }
   0xc   : > { %p327_p3 = scmp.ne.s32.totalorder %s1926_s26, %s1922_s25  ;;  %p328_p4 = scmp.eq.s32.totalorder %s1608_s30, 1 }
   0xd   : > { %s2059_s17 = scalar_select %p309_p1, %s1930_s27, %s311_s15  }
   0xe   : > { %p2061_p5 = por %p322_p2, %p321_p0  ;;  %p2065_p6 = por %p328_p4, %p327_p3 }
   0xf   : > { %p1611_p7 = scmp.ge.s32.totalorder %s1934_s28, 1  ;;  %p389_p8 = scmp.lt.s32.totalorder %s1934_s28, 3 }
  0x11   : > { %p390_p9 = pnand %p1611_p7, %p389_p8 }
  0x12   : > { %p432_p10 = scmp.lt.s32.totalorder (!%p390_p9), %s2044_s29, 1  ;;  %s2351_s0 = sld [smem:[#allocation5_spill]] (!%p390_p9) }
  0x13   : > { %393 = sbr.rel (%p390_p9) target bundleno = 2421 (0x975), region = 72  ;;  %s2352_s3 = sld [smem:[#allocation8_spill]] (!%p390_p9) }
  0x14   : > { %s2353_s1 = sld [smem:[#allocation6_spill]] (!%p390_p9)  ;;  %s1938_s23 = smov (!%p390_p9), 120  }
  0x15   : > { %s2354_s2 = sld [smem:[#allocation7_spill]] (!%p390_p9)  ;;  %s1940_s30 = smov (!%p390_p9), 88  }
  0x16   : > { %s1941_s15 = smov (!%p390_p9), 80   ;;  %s1942_s16 = smov (!%p390_p9), 112  }
  0x17   : > { %s1945_s22 = smov (!%p390_p9), 64  }
  0x18   : > { %s433_s20 = scalar_select %p432_p10, %s2044_s29, 1  ;;  %vm439_vm0 = vcmask 261120   ;;  %v1936_v8 = vmov 0.0   ;;  %vm1937_vm1 = vmmov 0   ;;  %v1616_v21 = vld [vmem:[%s2335_s4] ss:$0 sm:$0xff] }
  0x19   : > { %v471_v7 = vld [vmem:[%s2352_s3 + $0x18] sm:$0xff]  ;;  %1689 = vmatprep.subr.mxu1 %v1936_v8  ;;  %v470_v9 = vld [vmem:[%s2352_s3 + $0x10] sm:$0xff]  ;;  %1697 = vmatprep.mubr.msk.f32.mxu1 %vm1937_vm1, %v1936_v8  ;;  %v469_v10 = vld [vmem:[%s2352_s3 + $0x8] sm:$0xff]  ;;  %vm555_vm2 = vcmask 64512   ;;  %vm1229_vm3 = vcmask 130048   ;;  %vm1231_vm4 = vcmask 195584  }
  0x1a   : > { %s1613_s21 = sshll.u32 %s433_s20, 3  ;;  %1690 = vmatpush3.msra.mxu1 %v471_v7  ;;  %1710 = vmatprep.subr.mxu0 %v1936_v8  ;;  %v468_v11 = vld [vmem:[%s2352_s3] sm:$0xff]  ;;  %s1943_s20 = smov 72  }
  0x1b   : > { %s435_s24 = scalar_lea.vmem %s2351_s0, %s1613_s21  ;;  %1691 = vmatprep.subr.mxu1 %v1936_v8  ;;  %1712 = vmatprep.mubr.msk.f32.mxu0 %vm1937_vm1, %v1936_v8  ;;  %v1614_v16 = vld [vmem:[%s2353_s1] ss:$0 sm:$0xff]  ;;  %s1944_s21 = smov 104  }
  0x1c   : > { %v2076_v0 = vld [vmem:[%s435_s24] sm:$0xff]  ;;  %1692 = vmatpush3.msra.mxu1 %v470_v9  ;;  %s1939_s24 = smov 96  }
  0x1d   : > { %v440_v1 = vsel %vm439_vm0, %v2076_v0, 0.0  ;;  %1693 = vmatprep.subr.mxu1 %v1936_v8  ;;  %v1615_v18 = vld [vmem:[%s2354_s2] ss:$0 sm:$0xff] }
  0x1e   : > { %441 = vadd.xlane.f32.xlu0 %v440_v1  ;;  %1694 = vmatpush3.msra.mxu1 %v469_v10 }
  0x1f   : > { %1695 = vmatprep.subr.mxu1 %v1936_v8 }
  0x20   : > { %1696 = vmatpush3.msra.mxu1 %v468_v11 }
  0x21   : > { %1700 = vmatprep.subr.mxu1 %v1936_v8 }
  0xa7   : > { %v442_v2 = vpop.xlane.xlu0 %441 }
  0xa8   : > { %v444_v3 = vmul.f32 0.03125, %v442_v2 }
  0xaa   : > { %v445_v4 = vsub.f32 %v2076_v0, %v444_v3 }
  0xac   : > { %v446_v5 = vmul.f32 %v445_v4, %v445_v4 }
  0xae   : > { %v447_v6 = vsel %vm439_vm0, %v446_v5, 0.0 }
  0xaf   : > { %448 = vadd.xlane.f32.xlu0 %v447_v6 }
 0x138   : > { %v449_v12 = vpop.xlane.xlu0 %448 }
 0x139   : > { %v450_v13 = vmul.f32 0.03125, %v449_v12 }
 0x13b   : > { %v451_v14 = vadd.f32 1e-05, %v450_v13 }
 0x13d   : > { %1852 = vrsqrt.f32 %v451_v14 }
 0x14a   : > { %v1853_v15 = vpop.eup %1852 }
 0x14b   : > { %v453_v17 = vmul.f32 %v1853_v15, %v445_v4 }
 0x14d   : > { %v460_v19 = vmul.f32 %v1614_v16, %v453_v17 }
 0x14f   : > { %v467_v20 = vadd.f32 %v1615_v18, %v460_v19 }
 0x151   : > { %1698 = vmatmul.mubr.msk.f32.vlgmr.msra.gmra.mxu1 %vm439_vm0, %v467_v20 }
 0x152   : > { %1702 = vmatprep.mubr.msk.f32.mxu1 %vm1937_vm1, %v1936_v8 }
 0x211   : > { %v548_v22 = vpop.f32.mrf.mxu1 }
 0x212   : > { %v2116_v23 = vadd.f32 %v1616_v21, %v548_v22  ;;  %v1236_v22 = vld [vmem:[%s2336_s5 + $0x18] sm:$0xff] }
 0x213   : > { %v1699_v24 = vpop.f32.mrf.mxu1 }
 0x214   : > { %718 = vrot.lane.b32.xlu0 %v2116_v23, %s1938_s23  ;;  %553 = vrot.lane.b32.xlu1 %v2116_v23, %s1939_s24  ;;  %s1946_s23 = smov 48   ;;  %s1947_s24 = smov 40  }
 0x218   : > { %720 = vrot.lane.b32.xlu1 %v2116_v23, %s1940_s30  ;;  %s1948_s30 = smov 56  }
 0x21c   : > { %886 = vrot.lane.b32.xlu1 %v2116_v23, %s1941_s15  ;;  %s1949_s15 = smov 8  }
 0x220   : > { %884 = vrot.lane.b32.xlu1 %v2116_v23, %s1942_s16  ;;  %s1950_s16 = smov 16  }
 0x224   : > { %1052 = vrot.lane.b32.xlu1 %v2116_v23, %s1943_s20  ;;  %s1951_s20 = smov 24  }
 0x228   : > { %1050 = vrot.lane.b32.xlu1 %v2116_v23, %s1944_s21  ;;  %s429_s21 = sand.u32 1, %s1926_s26  }
 0x229   : > { %s1536_s2 = scalar_lea.sflag [#allocation3], %s429_s21 }
 0x286   : > { %v554_v25 = vpop.permute.xlu1 %553  ;;  %v719_v27 = vpop.permute.xlu0 %718 }
 0x287   : > { %1701 = vmatpush3.xpose.msk.msra.mxu1 %vm555_vm2, %v554_v25  ;;  %v1234_v25 = vld [vmem:[%s2336_s5 + $0x8] sm:$0xff] }
 0x288   : > { %1705 = vmatprep.subr.mxu1 %v1936_v8 }
 0x28a   : > { %1703 = vmatmul.mubr.msk.f32.vlgmr.msra.gmra.mxu1 %vm555_vm2, %v2116_v23  ;;  %v721_v26 = vpop.permute.xlu1 %720 }
 0x28b   : > { %1711 = vmatpush3.xpose.msk.msra.mxu0 %vm555_vm2, %v721_v26  ;;  %1707 = vmatprep.mubr.msk.f32.mxu1 %vm1937_vm1, %v1936_v8 }
 0x28c   : > { %1720 = vmatprep.subr.mxu0 %v1936_v8 }
 0x28e   : > { %1713 = vmatmul.mubr.msk.f32.vlgmr.msra.gmra.mxu0 %vm555_vm2, %v719_v27  ;;  %v887_v28 = vpop.permute.xlu1 %886  ;;  %v1233_v27 = vld [vmem:[%s2336_s5] sm:$0xff] }
 0x28f   : > { %1721 = vmatpush3.xpose.msk.msra.mxu0 %vm555_vm2, %v887_v28  ;;  %1722 = vmatprep.mubr.msk.f32.mxu0 %vm1937_vm1, %v1936_v8 }
 0x290   : > { %1730 = vmatprep.subr.mxu0 %v1936_v8 }
 0x292   : > { %v885_v29 = vpop.permute.xlu1 %884 }
 0x293   : > { %1723 = vmatmul.mubr.msk.f32.vlgmr.msra.gmra.mxu0 %vm555_vm2, %v885_v29 }
 0x294   : > { %1732 = vmatprep.mubr.msk.f32.mxu0 %vm1937_vm1, %v1936_v8 }
 0x296   : > { %v1053_v30 = vpop.permute.xlu1 %1052 }
 0x297   : > { %1731 = vmatpush3.xpose.msk.msra.mxu0 %vm555_vm2, %v1053_v30 }
 0x298   : > { %1762 = vmatprep.subr.mxu0 %v1936_v8 }
 0x29a   : > { %v1051_v31 = vpop.permute.xlu1 %1050 }
 0x29b   : > { %1733 = vmatmul.mubr.msk.f32.vlgmr.msra.gmra.mxu0 %vm555_vm2, %v1051_v31 }
 0x29c   : > { %1794 = vmatprep.mubr.msk.f32.mxu0 %vm1937_vm1, %v1936_v8 }
 0x34a   : > { %v626_v32 = vpop.f32.mrf.mxu1 }
 0x34b   : > { %v630_v33 = vmul.f32 0.35355338, %v626_v32 }
 0x34c   : > { %v1704_v34 = vpop.f32.mrf.mxu1 }
 0x34d   : > { %v631_v35 = vsel %vm555_vm2, %v630_v33, -inf }
 0x34e   : > { %v792_v36 = vpop.f32.mrf.mxu0  ;;  %632 = vmax.xlane.f32.xlu1 %v631_v35 }
 0x34f   : > { %v796_v37 = vmul.f32 0.35355338, %v792_v36 }
 0x350   : > { %v1714_v38 = vpop.f32.mrf.mxu0 }
 0x351   : > { %v797_v39 = vsel %vm555_vm2, %v796_v37, -inf }
 0x352   : > { %798 = vmax.xlane.f32.xlu0 %v797_v39 }
 0x353   : > { %v958_v40 = vpop.f32.mrf.mxu0 }
 0x354   : > { %v962_v41 = vmul.f32 0.35355338, %v958_v40  ;;  %v1630_v40 = vld [vmem:[%s2337_s6] ss:$0 sm:$0xff] }
 0x355   : > { %v1724_v42 = vpop.f32.mrf.mxu0 }
 0x356   : > { %v963_v43 = vsel %vm555_vm2, %v962_v41, -inf }
 0x357   : > { %964 = vmax.xlane.f32.xlu1 %v963_v43 }
 0x35b   : > { %v1124_v44 = vpop.f32.mrf.mxu0 }
 0x35c   : > { %v1128_v45 = vmul.f32 0.35355338, %v1124_v44 }
 0x35d   : > { %v1734_v46 = vpop.f32.mrf.mxu0 }
 0x35e   : > { %v1129_v47 = vsel %vm555_vm2, %v1128_v45, -inf }
 0x35f   : > { %1130 = vmax.xlane.f32.xlu0 %v1129_v47 }
 0x368   : > { %642 = vrot.lane.b32.xlu1 %v2116_v23, %s1945_s22  ;;  %s1612_s22 = sshll.u32 %s429_s21, 3 }
 0x3d7   : > { %v633_v48 = vpop.xlane.xlu1 %632 }
 0x3d8   : > { %v634_v49 = vsub.f32 %v630_v33, %v633_v48 }
 0x3da   : > { %v635_v50 = vmul.f32 1.442695, %v634_v49 }
 0x3db   : > { %v799_v51 = vpop.xlane.xlu0 %798 }
 0x3dc   : > { %1854 = vpow2.f32 %v635_v50  ;;  %v800_v52 = vsub.f32 %v796_v37, %v799_v51  ;;  %v1350_v51 = vld [vmem:[%s2340_s9 + $0x18] sm:$0xff] }
 0x3de   : > { %v801_v53 = vmul.f32 1.442695, %v800_v52  ;;  %v1348_v52 = vld [vmem:[%s2340_s9 + $0x8] sm:$0xff] }
 0x3e0   : > { %1856 = vpow2.f32 %v801_v53  ;;  %v965_v54 = vpop.xlane.xlu1 %964  ;;  %v1347_v53 = vld [vmem:[%s2340_s9] sm:$0xff] }
 0x3e1   : > { %v966_v55 = vsub.f32 %v962_v41, %v965_v54 }
 0x3e3   : > { %v967_v56 = vmul.f32 1.442695, %v966_v55 }
 0x3e4   : > { %v643_v57 = vpop.permute.xlu1 %642 }
 0x3e5   : > { %1858 = vpow2.f32 %v967_v56  ;;  %1706 = vmatpush3.msra.mxu1 %v643_v57 }
 0x3e6   : > { %1715 = vmatprep.subr.mxu1 %v1936_v8 }
 0x3e8   : > { %v1131_v58 = vpop.xlane.xlu0 %1130 }
 0x3e9   : > { %v1855_v59 = vpop.eup %1854  ;;  %v1132_v60 = vsub.f32 %v1128_v45, %v1131_v58  ;;  %v1632_v58 = vld [vmem:[%s2338_s7] ss:$0 sm:$0xff] }
 0x3ea   : > { %v637_v61 = vsel %vm555_vm2, %v1855_v59, 0.0 }
 0x3eb   : > { %v1133_v62 = vmul.f32 1.442695, %v1132_v60  ;;  %638 = vadd.xlane.f32.xlu1 %v637_v61  ;;  %v1633_v60 = vld [vmem:[%s2339_s8] ss:$0 sm:$0xff] }
 0x3ed   : > { %v1857_v63 = vpop.eup %1856  ;;  %1860 = vpow2.f32 %v1133_v62 }
 0x3ee   : > { %v803_v1 = vsel %vm555_vm2, %v1857_v63, 0.0 }
 0x3ef   : > { %804 = vadd.xlane.f32.xlu0 %v803_v1  ;;  %v1454_v1 = vld [vmem:[%s2342_s11 + $0x70] sm:$0xff] }
 0x3f2   : > { %v1859_v2 = vpop.eup %1858 }
 0x3f3   : > { %v969_v3 = vsel %vm555_vm2, %v1859_v2, 0.0 }
 0x3f4   : > { %970 = vadd.xlane.f32.xlu1 %v969_v3  ;;  %v1452_v3 = vld [vmem:[%s2342_s11 + $0x60] sm:$0xff] }
 0x3fa   : > { %v1861_v4 = vpop.eup %1860 }
 0x3fb   : > { %v1135_v5 = vsel %vm555_vm2, %v1861_v4, 0.0 }
 0x3fc   : > { %1136 = vadd.xlane.f32.xlu0 %v1135_v5  ;;  %v1450_v5 = vld [vmem:[%s2342_s11 + $0x50] sm:$0xff] }
 0x405   : > { %974 = vrot.lane.b32.xlu1 %v2116_v23, %s1946_s23 }
 0x409   : > { %1140 = vrot.lane.b32.xlu1 %v2116_v23, %s1947_s24 }
 0x412   : > { %808 = vrot.lane.b32.xlu0 %v2116_v23, %s1948_s30  ;;  %v1235_v23 = vld [vmem:[%s2336_s5 + $0x10] sm:$0xff]  ;;  %s1638_s30 = sshll.u32 %s2044_s29, 7  ;;  %s1952_s29 = smov [#allocation2]  }
 0x413   : > { %s1547_s1 = scalar_lea.hbm %s2344_s13, %s1638_s30 }
 0x474   : > { %v639_v6 = vpop.xlane.xlu1 %638 }
 0x475   : > { %1862 = vrcp.f32 %v639_v6  ;;  %v1449_v6 = vld [vmem:[%s2342_s11 + $0x48] sm:$0xff] }
 0x478   : > { %v805_v7 = vpop.xlane.xlu0 %804 }
 0x479   : > { %1864 = vrcp.f32 %v805_v7  ;;  %v1448_v7 = vld [vmem:[%s2342_s11 + $0x40] sm:$0xff] }
 0x47d   : > { %v971_v9 = vpop.xlane.xlu1 %970 }
 0x47e   : > { %1866 = vrcp.f32 %v971_v9  ;;  %v1447_v9 = vld [vmem:[%s2342_s11 + $0x38] sm:$0xff] }
 0x481   : > { %v975_v14 = vpop.permute.xlu1 %974 }
 0x482   : > { %v1863_v10 = vpop.eup %1862 }
 0x483   : > { %v641_v11 = vmul.f32 %v1863_v10, %v1855_v59  ;;  %v1446_v10 = vld [vmem:[%s2342_s11 + $0x30] sm:$0xff] }
 0x485   : > { %v1137_v12 = vpop.xlane.xlu0 %1136  ;;  %1708 = vmatmul.mubr.msk.f32.vlgmr.msra.gmra.mxu1 %vm555_vm2, %v641_v11  ;;  %v1141_v19 = vpop.permute.xlu1 %1140  ;;  %v1445_v11 = vld [vmem:[%s2342_s11 + $0x28] sm:$0xff] }
 0x486   : > { %v1865_v13 = vpop.eup %1864  ;;  %1868 = vrcp.f32 %v1137_v12  ;;  %1717 = vmatprep.mubr.msk.f32.mxu1 %vm1937_vm1, %v1936_v8  ;;  %v1444_v12 = vld [vmem:[%s2342_s11 + $0x20] sm:$0xff] }
 0x487   : > { %v807_v16 = vmul.f32 %v1865_v13, %v1857_v63  ;;  %v1455_v63 = vld [vmem:[%s2342_s11 + $0x78] sm:$0xff] }
 0x488   : > { %1763 = vmatpush3.msra.mxu0 %v1455_v63  ;;  %v1443_v13 = vld [vmem:[%s2342_s11 + $0x18] sm:$0xff] }
 0x489   : > { %v809_v15 = vpop.permute.xlu0 %808  ;;  %1764 = vmatprep.subr.mxu0 %v1936_v8 }
 0x48a   : > { %1716 = vmatpush3.msra.mxu1 %v809_v15  ;;  %1765 = vmatpush3.msra.mxu0 %v1454_v1  ;;  %v1441_v15 = vld [vmem:[%s2342_s11 + $0x8] sm:$0xff] }
 0x48b   : > { %v1867_v17 = vpop.eup %1866  ;;  %1718 = vmatmul.mubr.msk.f32.vlgmr.msra.gmra.mxu1 %vm555_vm2, %v807_v16  ;;  %1725 = vmatprep.subr.mxu1 %v1936_v8  ;;  %v1440_v16 = vld [vmem:[%s2342_s11] sm:$0xff] }
 0x48c   : > { %1726 = vmatpush3.msra.mxu1 %v975_v14  ;;  %1727 = vmatprep.mubr.msk.f32.mxu1 %vm1937_vm1, %v1936_v8  ;;  %v973_v18 = vmul.f32 %v1867_v17, %v1859_v2  ;;  %v1453_v2 = vld [vmem:[%s2342_s11 + $0x68] sm:$0xff]  ;;  %v1442_v14 = vld [vmem:[%s2342_s11 + $0x10] sm:$0xff]  ;;  %v1634_v17 = vld [vmem:[%s2341_s10] ss:$0 sm:$0xff] }
 0x48d   : > { %1735 = vmatprep.subr.mxu1 %v1936_v8  ;;  %1766 = vmatprep.subr.mxu0 %v1936_v8 }
 0x48e   : > { %1767 = vmatpush3.msra.mxu0 %v1453_v2 }
 0x48f   : > { %1728 = vmatmul.mubr.msk.f32.vlgmr.msra.gmra.mxu1 %vm555_vm2, %v973_v18  ;;  %1768 = vmatprep.subr.mxu0 %v1936_v8 }
 0x490   : > { %1736 = vmatpush3.msra.mxu1 %v1141_v19  ;;  %1737 = vmatprep.mubr.msk.f32.mxu1 %vm1937_vm1, %v1936_v8 }
 0x491   : > { %1740 = vmatprep.subr.mxu1 %v1936_v8  ;;  %1769 = vmatpush3.msra.mxu0 %v1452_v3 }
 0x492   : > { %1770 = vmatprep.subr.mxu0 %v1936_v8 }
 0x493   : > { %v1869_v20 = vpop.eup %1868 }
 0x494   : > { %v1139_v21 = vmul.f32 %v1869_v20, %v1861_v4  ;;  %v1451_v4 = vld [vmem:[%s2342_s11 + $0x58] sm:$0xff] }
 0x495   : > { %1771 = vmatpush3.msra.mxu0 %v1451_v4 }
 0x496   : > { %1738 = vmatmul.mubr.msk.f32.vlgmr.msra.gmra.mxu1 %vm555_vm2, %v1139_v21  ;;  %1772 = vmatprep.subr.mxu0 %v1936_v8 }
 0x497   : > { %1748 = vmatprep.mubr.msk.f32.mxu1 %vm1937_vm1, %v1936_v8  ;;  %1741 = vmatpush3.msra.mxu1 %v1236_v22 }
 0x498   : > { %1742 = vmatprep.subr.mxu1 %v1936_v8  ;;  %1773 = vmatpush3.msra.mxu0 %v1450_v5 }
 0x499   : > { %1743 = vmatpush3.msra.mxu1 %v1235_v23  ;;  %1774 = vmatprep.subr.mxu0 %v1936_v8 }
 0x49a   : > { %1744 = vmatprep.subr.mxu1 %v1936_v8  ;;  %1775 = vmatpush3.msra.mxu0 %v1449_v6 }
 0x49b   : > { %1745 = vmatpush3.msra.mxu1 %v1234_v25  ;;  %1776 = vmatprep.subr.mxu0 %v1936_v8 }
 0x49c   : > { %1746 = vmatprep.subr.mxu1 %v1936_v8  ;;  %1777 = vmatpush3.msra.mxu0 %v1448_v7 }
 0x49d   : > { %1747 = vmatpush3.msra.mxu1 %v1233_v27  ;;  %1778 = vmatprep.subr.mxu0 %v1936_v8 }
 0x49e   : > { %1751 = vmatprep.subr.mxu1 %v1936_v8  ;;  %1779 = vmatpush3.msra.mxu0 %v1447_v9 }
 0x49f   : > { %1780 = vmatprep.subr.mxu0 %v1936_v8 }
 0x4a0   : > { %1781 = vmatpush3.msra.mxu0 %v1446_v10 }
 0x4a1   : > { %1782 = vmatprep.subr.mxu0 %v1936_v8 }
 0x4a2   : > { %1783 = vmatpush3.msra.mxu0 %v1445_v11 }
 0x4a3   : > { %1784 = vmatprep.subr.mxu0 %v1936_v8 }
 0x4a4   : > { %1785 = vmatpush3.msra.mxu0 %v1444_v12 }
 0x4a5   : > { %1786 = vmatprep.subr.mxu0 %v1936_v8 }
 0x4a6   : > { %1787 = vmatpush3.msra.mxu0 %v1443_v13 }
 0x4a7   : > { %1788 = vmatprep.subr.mxu0 %v1936_v8 }
 0x4a8   : > { %1789 = vmatpush3.msra.mxu0 %v1442_v14 }
 0x4a9   : > { %1790 = vmatprep.subr.mxu0 %v1936_v8 }
 0x4aa   : > { %1791 = vmatpush3.msra.mxu0 %v1441_v15 }
 0x4ab   : > { %1792 = vmatprep.subr.mxu0 %v1936_v8 }
 0x4ac   : > { %1793 = vmatpush3.msra.mxu0 %v1440_v16 }
 0x545   : > { %v714_v24 = vpop.f32.mrf.mxu1 }
 0x547   : > { %v1709_v26 = vpop.f32.mrf.mxu1 }
 0x54b   : > { %v880_v28 = vpop.f32.mrf.mxu1 }
 0x54c   : > { %1217 = vrot.lane.b32.xlu0 %v880_v28, %s1949_s15  ;;  %s431_s15 = scalar_lea.vmem [#allocation2], %s1612_s22  ;;  %s1878_s22 = sshll.u32 %s1952_s29, 4  ;;  %s1879_s22 = int_to_ptr.vmem [resolvable:$false] %s1878_s22 }
 0x54d   : > { %v1719_v29 = vpop.f32.mrf.mxu1  ;;  %s1880_s23 = scalar_lea.vmem %s1879_s22, 256 }
 0x54e   : > { %v1636_v29 = vld [vmem:[%s2343_s12] ss:$0 sm:$0xff] }
 0x54f   : > { %v1046_v30 = vpop.f32.mrf.mxu1 }
 0x550   : > { %1221 = vrot.lane.b32.xlu1 %v1046_v30, %s1950_s16  ;;  %s1549_s16 = sshll.u32 %s431_s15, 4  ;;  %s1550_s16 = int_to_ptr.vmem [resolvable:$true] %s1549_s16 }
 0x551   : > { %v1729_v31 = vpop.f32.mrf.mxu1  ;;  %s1874_s3 = scalar_lea.vmem %s1550_s16, 128  ;;  %p1881_p0 = scmp.lt.s32.totalorder %s1550_s16, %s1879_s22 }
 0x552   : > { %p1875_p11 = scmp.ne.s32.totalorder %s1550_s16, %s1874_s3  ;;  %p1882_p1 = scmp.lt.s32.totalorder %s1880_s23, %s1874_s3 }
 0x554   : > { %p1876_p12 = pnand %p1875_p11, %p2061_p5  ;;  %p1883_p2 = por %p1882_p1, %p1881_p0 }
 0x556   : > { %v1212_v32 = vpop.f32.mrf.mxu1  ;;  %p1877_p13 = pneg %p1876_p12 }
 0x557   : > { %1225 = vrot.lane.b32.xlu0 %v1212_v32, %s1951_s20 }
 0x558   : > { %v1739_v33 = vpop.f32.mrf.mxu1  ;;  %p1884_p3 = pnand %p1883_p2, %p1877_p13 }
 0x5be   : > { %v1218_v34 = vpop.permute.xlu0 %1217 }
 0x5bf   : > { %v1228_v36 = vsel %vm555_vm2, %v714_v24, %v1218_v34 }
 0x5c2   : > { %v1222_v35 = vpop.permute.xlu1 %1221 }
 0x5c3   : > { %v1230_v37 = vsel %vm1229_vm3, %v1228_v36, %v1222_v35 }
 0x5c9   : > { %v1226_v38 = vpop.permute.xlu0 %1225 }
 0x5ca   : > { %v1232_v39 = vsel %vm1231_vm4, %v1230_v37, %v1226_v38 }
 0x5cb   : > { %1749 = vmatmul.mubr.msk.f32.vlgmr.msra.gmra.mxu1 %vm439_vm0, %v1232_v39 }
 0x5cc   : > { %1759 = vmatprep.mubr.msk.f32.mxu1 %vm1937_vm1, %v1936_v8  ;;  %1752 = vmatpush3.msra.mxu1 %v1350_v51 }
 0x5cd   : > { %1753 = vmatprep.subr.mxu1 %v1936_v8 }
 0x68b   : > { %v1313_v41 = vpop.f32.mrf.mxu1 }
 0x68c   : > { %v1314_v42 = vadd.f32 %v1630_v40, %v1313_v41 }
 0x68d   : > { %v1750_v43 = vpop.f32.mrf.mxu1 }
 0x68e   : > { %v2198_v44 = vadd.f32 %v1314_v42, %v2076_v0  ;;  %v1349_v0 = vld [vmem:[%s2340_s9 + $0x10] sm:$0xff] }
 0x68f   : > { %1754 = vmatpush3.msra.mxu1 %v1349_v0 }
 0x690   : > { %v1320_v45 = vsel %vm439_vm0, %v2198_v44, 0.0  ;;  %1755 = vmatprep.subr.mxu1 %v1936_v8 }
 0x691   : > { %1321 = vadd.xlane.f32.xlu1 %v1320_v45  ;;  %1756 = vmatpush3.msra.mxu1 %v1348_v52 }
 0x692   : > { %1757 = vmatprep.subr.mxu1 %v1936_v8 }
 0x693   : > { %1758 = vmatpush3.msra.mxu1 %v1347_v53 }
 0x71a   : > { %v1322_v46 = vpop.xlane.xlu1 %1321 }
 0x71b   : > { %v1323_v47 = vmul.f32 0.03125, %v1322_v46 }
 0x71d   : > { %v1324_v48 = vsub.f32 %v2198_v44, %v1323_v47 }
 0x71f   : > { %v1325_v49 = vmul.f32 %v1324_v48, %v1324_v48 }
 0x721   : > { %v1326_v50 = vsel %vm439_vm0, %v1325_v49, 0.0 }
 0x722   : > { %1327 = vadd.xlane.f32.xlu0 %v1326_v50 }
 0x7ab   : > { %v1328_v54 = vpop.xlane.xlu0 %1327 }
 0x7ac   : > { %v1329_v55 = vmul.f32 0.03125, %v1328_v54 }
 0x7ae   : > { %v1330_v56 = vadd.f32 1e-05, %v1329_v55 }
 0x7b0   : > { %1870 = vrsqrt.f32 %v1330_v56 }
 0x7bd   : > { %v1871_v57 = vpop.eup %1870 }
 0x7be   : > { %v1332_v59 = vmul.f32 %v1871_v57, %v1324_v48 }
 0x7c0   : > { %v1339_v61 = vmul.f32 %v1632_v58, %v1332_v59 }
 0x7c2   : > { %v1346_v62 = vadd.f32 %v1633_v60, %v1339_v61 }
 0x7c4   : > { %1760 = vmatmul.mubr.msk.f32.vlgmr.msra.gmra.mxu1 %vm439_vm0, %v1346_v62 }
 0x884   : > { %v1427_v18 = vpop.f32.mrf.mxu1 }
 0x885   : > { %v1428_v19 = vadd.f32 %v1634_v17, %v1427_v18 }
 0x886   : > { %v1761_v20 = vpop.f32.mrf.mxu1 }
 0x887   : > { %v1432_v21 = vmul.f32 0.044715, %v1428_v19  ;;  %v1431_v27 = vmul.f32 0.5, %v1428_v19 }
 0x889   : > { %v1433_v22 = vmul.f32 %v1432_v21, %v1428_v19 }
 0x88b   : > { %v1434_v23 = vmul.f32 %v1433_v22, %v1428_v19 }
 0x88d   : > { %v1435_v24 = vadd.f32 %v1434_v23, %v1428_v19 }
 0x88f   : > { %v1436_v25 = vmul.f32 0.7978846, %v1435_v24 }
 0x891   : > { %1872 = vtanh.f32 %v1436_v25 }
 0x89e   : > { %v1873_v26 = vpop.eup %1872 }
 0x89f   : > { %v1438_v28 = vadd.f32 1.0, %v1873_v26 }
 0x8a1   : > { %v1439_v8 = vmul.f32 %v1438_v28, %v1431_v27 }
 0x8a3   : > { %1795 = vmatmul.mubr.f32.vlgmr.msra.gmra.mxu0 %v1439_v8 }
 0x963   : > { %v1529_v30 = vpop.f32.mrf.mxu0 }
 0x964   : > { %v1530_v31 = vadd.f32 %v1636_v29, %v1529_v30 }
 0x965   : > { %v1796_v32 = vpop.f32.mrf.mxu0 }
 0x966   : > { %v1533_v33 = vadd.f32 %v1530_v31, %v2198_v44 }
 0x968   : > { %1534 = vst.msk [vmem:[%s431_s15] sm:$0xff] %vm439_vm0, %v1533_v33 }
 0x969   : > { %1887 = shalt.err (!%p1884_p3)
}
 0x96a   : > { %s1888_s0 = scalar_lea.hbm %s1547_s1, 128  ;;  %s1892_s30 = scalar_lea.hbm %s2344_s13, 256 }
 0x96b   : > { %p1889_p4 = scmp.ne.s32.totalorder %s1547_s1, %s1888_s0  ;;  %p1893_p9 = scmp.lt.s32.totalorder %s1547_s1, %s2344_s13 }
 0x96c   : > { %p1894_p10 = scmp.lt.s32.totalorder %s1892_s30, %s1888_s0 }
 0x96d   : > { %p1890_p7 = pnand %p1889_p4, %p2061_p5 }
 0x96e   : > { %p1895_p11 = por %p1894_p10, %p1893_p9 }
 0x96f   : > { %p1891_p8 = pneg %p1890_p7 }
 0x971   : > { %p1896_p12 = pnand %p1895_p11, %p1891_p8 }
 0x973   : > { %1899 = shalt.err (!%p1896_p12)
}
 0x974   : > { %1797 = dma.vmem_to_hbm [thread:$0]  (%p2061_p5), %s1550_s16, 128, %s1547_s1, %s1536_s2  }
 0x975 PF: > { %p1803_p13 = scmp.ge.s32.totalorder %s1934_s28, 2  ;;  %s1561_s3 = sand.u32 1, %s1922_s25  }
 0x976   : > { %s1562_s29 = scalar_lea.sflag [#allocation3], %s1561_s3 }
 0x977   : > { %p1800_p0 = pnand %p1803_p13, %p2065_p6 }
 0x979   : > { %p1801_p1 = pneg %p1800_p0 }
 0x97b   : > { %1917 = dma.done.wait (%p1801_p1), %s1562_s29, 128  }
 0x97c   : > { %1919 = vsyncadd (%p1801_p1), %s1562_s29, 4294967168  ;;  %p23_p2 = scmp.ge.s32.totalorder %s2048_s14, 4   ;;  %s2355_s25 = smov %s1926_s26 }
 0x97d   : > { %s2356_s26 = smov %s1930_s27  ;;  %s2357_s27 = smov %s2059_s17 }
 0x97e   : > { %s2358_s28 = smov %s2048_s14  ;;  %25 = sbr.rel (!%p23_p2) target bundleno = 8 (0x8), region = 107 }
 0x983   :  { %1567 = vsyncpa [#allocation3], 1 }
 0x984   :  { %1569 = vsyncpa [#allocation3 + $0x1], 1 }

</bundles_post_ra>
